<compile_context>
chip_gen: v7x
topology: tpu7x:2x2x1
jax: 0.10.0
libtpu: 0.0.40
codegen_flags: <defaults>
</compile_context>

<pallas_src>
import functools
import math

import jax
import jax.numpy as jnp
from jax.experimental import pallas as pl
from jax.experimental.pallas import tpu as pltpu


# ----------------------------------------------------------------------------
# Kernels
# ----------------------------------------------------------------------------

def _gate_kernel(w_ref, u_ref, b_ref, x_ref, h_ref, o_ref, *, activation,
                 compute_dtype):
    """out = activation(W @ x + U @ hidden + bias) for one (rows, tn) lane tile."""
    w = w_ref[...].astype(compute_dtype)
    u = u_ref[...].astype(compute_dtype)
    x = x_ref[...].astype(compute_dtype)
    h = h_ref[...].astype(compute_dtype)
    pre = jnp.dot(w, x, preferred_element_type=jnp.float32)
    pre = pre + jnp.dot(u, h, preferred_element_type=jnp.float32)
    pre = pre + b_ref[...].astype(jnp.float32)
    o_ref[...] = activation(pre).astype(o_ref.dtype)


def _gate_kernel_batched(w_ref, u_ref, b_ref, x_ref, h_ref, o_ref, *,
                         activation, compute_dtype):
    """Same gate applied to sample b of a (B, rows, cols) batch.

    x_ref / h_ref / o_ref are (1, rows, cp) blocks; W / U / bias are pinned.
    """
    w = w_ref[...].astype(compute_dtype)
    u = u_ref[...].astype(compute_dtype)
    x = x_ref[0].astype(compute_dtype)
    h = h_ref[0].astype(compute_dtype)
    pre = jnp.dot(w, x, preferred_element_type=jnp.float32)
    pre = pre + jnp.dot(u, h, preferred_element_type=jnp.float32)
    pre = pre + b_ref[...].astype(jnp.float32)
    o_ref[0] = activation(pre).astype(o_ref.dtype)


def _gru_cell_kernel(wstk_ref, uzr_ref, uh_ref, bstk_ref, x_ref, q_ref, o_ref,
                     *, rows, compute_dtype):
    """Whole mat_GRU_cell step for one (rows, tn) lane tile.

      z      = sigmoid(Wz x + Uz q + bz)
      r      = sigmoid(Wr x + Ur q + br)
      htilda = tanh   (Wh x + Uh (r*q) + bh)
      new_q  = (1 - z) * q + z * htilda
    """
    x = x_ref[...].astype(compute_dtype)
    q32 = q_ref[...].astype(jnp.float32)
    qc = q_ref[...].astype(compute_dtype)

    # One MXU push for all three W matmuls (M = 3*rows) and one for [Uz; Ur].
    wx = jnp.dot(wstk_ref[...].astype(compute_dtype), x,
                 preferred_element_type=jnp.float32)            # (3*rows, tn)
    uq = jnp.dot(uzr_ref[...].astype(compute_dtype), qc,
                 preferred_element_type=jnp.float32)            # (2*rows, tn)
    b = bstk_ref[...].astype(jnp.float32)                       # (3*rows, tn)

    z = jax.nn.sigmoid(wx[0:rows] + uq[0:rows] + b[0:rows])
    r = jax.nn.sigmoid(wx[rows:2 * rows] + uq[rows:2 * rows] + b[rows:2 * rows])

    h_in = (r * q32).astype(compute_dtype)
    htilda = jnp.tanh(wx[2 * rows:3 * rows]
                      + jnp.dot(uh_ref[...].astype(compute_dtype), h_in,
                                preferred_element_type=jnp.float32)
                      + b[2 * rows:3 * rows])

    o_ref[...] = ((1.0 - z) * q32 + z * htilda).astype(o_ref.dtype)


# ----------------------------------------------------------------------------
# Wrappers
# ----------------------------------------------------------------------------

def _pad_lanes(a, pad):
    return jnp.pad(a, ((0, 0), (0, pad))) if pad else a


def _pick_tile_n(cp, max_tile=512):
    """Largest multiple of 128 that divides cp and is <= max_tile (cp % 128 == 0)."""
    if cp <= max_tile:
        return cp
    for tn in range(max_tile - max_tile % 128, 127, -128):
        if cp % tn == 0:
            return tn
    return 128


def mat_gru_gate(W, U, bias, x, hidden, activation=jax.nn.sigmoid, *,
                 compute_dtype=jnp.float32, max_tile_n=512):
    """Single mat_GRU_gate forward: activation(W @ x + U @ hidden + bias)."""
    rows, cols = x.shape
    assert W.shape == (rows, rows) and U.shape == (rows, rows)
    assert bias.shape == (rows, cols) and hidden.shape == (rows, cols)

    # Lane-dense output: round the lane dim up to a multiple of 128 if ragged.
    # (Zero-copy fast path when cols is already a multiple of 128.)
    pad = (-cols) % 128
    xp, hp, bp = _pad_lanes(x, pad), _pad_lanes(hidden, pad), _pad_lanes(bias, pad)
    cp = cols + pad
    tn = _pick_tile_n(cp, max_tile_n)

    kernel = functools.partial(_gate_kernel, activation=activation,
                               compute_dtype=compute_dtype)
    pinned = lambda j: (0, 0)
    tiled = lambda j: (0, j)
    out = pl.pallas_call(
        kernel,
        out_shape=jax.ShapeDtypeStruct((rows, cp), x.dtype),
        grid=(cp // tn,),
        in_specs=[pl.BlockSpec((rows, rows), pinned),   # W   (VMEM-resident)
                  pl.BlockSpec((rows, rows), pinned),   # U   (VMEM-resident)
                  pl.BlockSpec((rows, tn), tiled),      # bias
                  pl.BlockSpec((rows, tn), tiled),      # x
                  pl.BlockSpec((rows, tn), tiled)],     # hidden
        out_specs=pl.BlockSpec((rows, tn), tiled),
        compiler_params=pltpu.CompilerParams(
            dimension_semantics=("parallel",)),
    )(W, U, bp, xp, hp)
    return out[:, :cols] if pad else out


def mat_gru_gate_batched(W, U, bias, xs, hiddens, activation=jax.nn.sigmoid, *,
                         compute_dtype=jnp.float32):
    """Same gate applied to B independent (x, hidden) pairs: xs (B, rows, cols).

    Grid over B (parallel -> both TensorCores on v7x); W / U / bias are pinned
    via their index_maps (single DMA, no jnp.tile of the bias).
    """
    B, rows, cols = xs.shape
    pad = (-cols) % 128
    cp = cols + pad
    xsp = jnp.pad(xs, ((0, 0), (0, 0), (0, pad))) if pad else xs
    hsp = jnp.pad(hiddens, ((0, 0), (0, 0), (0, pad))) if pad else hiddens
    bp = _pad_lanes(bias, pad)

    kernel = functools.partial(_gate_kernel_batched, activation=activation,
                               compute_dtype=compute_dtype)
    out = pl.pallas_call(
        kernel,
        out_shape=jax.ShapeDtypeStruct((B, rows, cp), xs.dtype),
        grid=(B,),
        in_specs=[pl.BlockSpec((rows, rows), lambda b: (0, 0)),
                  pl.BlockSpec((rows, rows), lambda b: (0, 0)),
                  pl.BlockSpec((rows, cp), lambda b: (0, 0)),
                  pl.BlockSpec((1, rows, cp), lambda b: (b, 0, 0)),
                  pl.BlockSpec((1, rows, cp), lambda b: (b, 0, 0))],
        out_specs=pl.BlockSpec((1, rows, cp), lambda b: (b, 0, 0)),
        compiler_params=pltpu.CompilerParams(
            dimension_semantics=("parallel",)),
    )(W, U, bp, xsp, hsp)
    return out[..., :cols] if pad else out


def stack_gru_cell_params(update, reset, htilda):
    """One-time (amortized across timesteps) stacking of the 3 gates' params.

    update / reset / htilda are (W, U, bias) triples as in mat_GRU_gate.
    """
    (Wz, Uz, bz), (Wr, Ur, br), (Wh, Uh, bh) = update, reset, htilda
    W_stack = jnp.concatenate([Wz, Wr, Wh], axis=0)   # (3*rows, rows)
    U_zr = jnp.concatenate([Uz, Ur], axis=0)          # (2*rows, rows)
    b_stack = jnp.concatenate([bz, br, bh], axis=0)   # (3*rows, cols)
    return W_stack, U_zr, Uh, b_stack


def mat_gru_cell(W_stack, U_zr, Uh, b_stack, x, prev_q, *,
                 compute_dtype=jnp.float32, max_tile_n=512):
    """Whole mat_GRU_cell step (update/reset/htilda gates + blend) in ONE pallas_call."""
    rows, cols = x.shape
    assert W_stack.shape == (3 * rows, rows)
    assert U_zr.shape == (2 * rows, rows) and Uh.shape == (rows, rows)
    assert b_stack.shape == (3 * rows, cols) and prev_q.shape == (rows, cols)

    pad = (-cols) % 128
    xp, qp = _pad_lanes(x, pad), _pad_lanes(prev_q, pad)
    bp = _pad_lanes(b_stack, pad)
    cp = cols + pad
    tn = _pick_tile_n(cp, max_tile_n)

    kernel = functools.partial(_gru_cell_kernel, rows=rows,
                               compute_dtype=compute_dtype)
    pinned = lambda j: (0, 0)
    tiled = lambda j: (0, j)
    out = pl.pallas_call(
        kernel,
        out_shape=jax.ShapeDtypeStruct((rows, cp), x.dtype),
        grid=(cp // tn,),
        in_specs=[pl.BlockSpec((3 * rows, rows), pinned),   # [Wz; Wr; Wh]
                  pl.BlockSpec((2 * rows, rows), pinned),   # [Uz; Ur]
                  pl.BlockSpec((rows, rows), pinned),       # Uh
                  pl.BlockSpec((3 * rows, tn), tiled),      # [bz; br; bh]
                  pl.BlockSpec((rows, tn), tiled),          # x (z_topk)
                  pl.BlockSpec((rows, tn), tiled)],         # prev_Q
        out_specs=pl.BlockSpec((rows, tn), tiled),
        compiler_params=pltpu.CompilerParams(
            dimension_semantics=("parallel",)),
    )(W_stack, U_zr, Uh, bp, xp, qp)
    return out[:, :cols] if pad else out


def init_params(key, rows, cols, dtype=jnp.float32):
    # Matches mat_GRU_gate.__init__: W, U ~ U(-stdv, stdv), stdv = 1/sqrt(rows),
    # bias = zeros(rows, cols).
    stdv = 1.0 / math.sqrt(rows)
    kw, ku = jax.random.split(key)
    W = jax.random.uniform(kw, (rows, rows), dtype, minval=-stdv, maxval=stdv)
    U = jax.random.uniform(ku, (rows, rows), dtype, minval=-stdv, maxval=stdv)
    bias = jnp.zeros((rows, cols), dtype)
    return W, U, bias


if __name__ == "__main__":
    rows, cols, B = 32, 128, 4      # cols % 128 == 0 -> lane-dense, no padding
    key = jax.random.PRNGKey(0)
    kz, kr, kh, kx, kq, kbx, kbh, kb1, kb2, kb3 = jax.random.split(key, 10)

    # Three gates of a mat_GRU_cell (update / reset / htilda). Biases are made
    # nonzero (the module inits them to zero) so the bias path is exercised.
    Wz, Uz, _ = init_params(kz, rows, cols)
    Wr, Ur, _ = init_params(kr, rows, cols)
    Wh, Uh, _ = init_params(kh, rows, cols)
    bz = 0.1 * jax.random.normal(kb1, (rows, cols), jnp.float32)
    br = 0.1 * jax.random.normal(kb2, (rows, cols), jnp.float32)
    bh = 0.1 * jax.random.normal(kb3, (rows, cols), jnp.float32)

    x = jax.random.normal(kx, (rows, cols), jnp.float32)    # z_topk
    q = jax.random.normal(kq, (rows, cols), jnp.float32)    # prev_Q / hidden
    xs = jax.random.normal(kbx, (B, rows, cols), jnp.float32)
    hs = jax.random.normal(kbh, (B, rows, cols), jnp.float32)

    # ---- single gate (the original module forward), sigmoid & tanh ----
    out_sig = jax.block_until_ready(
        mat_gru_gate(Wz, Uz, bz, x, q, activation=jax.nn.sigmoid))
    out_tanh = jax.block_until_ready(
        mat_gru_gate(Wh, Uh, bh, x, q, activation=jnp.tanh))
    ref_sig = jax.nn.sigmoid(Wz @ x + Uz @ q + bz)
    ref_tanh = jnp.tanh(Wh @ x + Uh @ q + bh)
    assert out_sig.shape == (rows, cols) and out_tanh.shape == (rows, cols)
    assert jnp.allclose(out_sig, ref_sig, atol=2e-2, rtol=0)
    assert jnp.allclose(out_tanh, ref_tanh, atol=2e-2, rtol=0)

    # ---- ragged lane dim (exercises the pad-to-128 lane-dense path) ----
    cols2 = 48
    out_ragged = jax.block_until_ready(
        mat_gru_gate(Wz, Uz, bz[:, :cols2], x[:, :cols2], q[:, :cols2]))
    ref_ragged = jax.nn.sigmoid(Wz @ x[:, :cols2] + Uz @ q[:, :cols2] + bz[:, :cols2])
    assert out_ragged.shape == (rows, cols2)
    assert jnp.allclose(out_ragged, ref_ragged, atol=2e-2, rtol=0)

    # ---- batched gate (grid over B, pinned W/U/bias, parallel for v7x) ----
    out_b = jax.block_until_ready(
        mat_gru_gate_batched(Wz, Uz, bz, xs, hs, activation=jax.nn.sigmoid))
    ref_b = jax.nn.sigmoid(jnp.einsum("rk,bkc->brc", Wz, xs)
                           + jnp.einsum("rk,bkc->brc", Uz, hs) + bz[None])
    assert out_b.shape == (B, rows, cols)
    assert jnp.allclose(out_b, ref_b, atol=2e-2, rtol=0)

    # ---- whole mat_GRU_cell (3 gates + blend) in one pallas_call ----
    stacked = stack_gru_cell_params((Wz, Uz, bz), (Wr, Ur, br), (Wh, Uh, bh))
    new_q = jax.block_until_ready(mat_gru_cell(*stacked, x, q))
    z_ref = jax.nn.sigmoid(Wz @ x + Uz @ q + bz)
    r_ref = jax.nn.sigmoid(Wr @ x + Ur @ q + br)
    h_ref = jnp.tanh(Wh @ x + Uh @ (r_ref * q) + bh)
    ref_q = (1.0 - z_ref) * q + z_ref * h_ref
    assert new_q.shape == (rows, cols)
    assert jnp.allclose(new_q, ref_q, atol=3e-2, rtol=0)

    print("KERNEL_OK")
</pallas_src>

<mosaic_0001>
module attributes {stable_mosaic.version = 11 : i64} {
  func.func @_gate_kernel(%arg0: i32, %arg1: memref<32x32xf32, #tpu.memory_space<vmem>>, %arg2: memref<32x32xf32, #tpu.memory_space<vmem>>, %arg3: memref<32x128xf32, #tpu.memory_space<vmem>>, %arg4: memref<32x128xf32, #tpu.memory_space<vmem>>, %arg5: memref<32x128xf32, #tpu.memory_space<vmem>>, %arg6: memref<32x128xf32, #tpu.memory_space<vmem>>) attributes {dimension_semantics = [#tpu.dimension_semantics<parallel>], iteration_bounds = array<i64: 1>, scalar_prefetch = 0 : i64, scratch_operands = 0 : i64, tpu.core_type = #tpu.core_type<tc>, window_params = [{pipeline_mode = #tpu.pipeline_mode<synchronous>, transform_indices = @transform_0, window_bounds = array<i64: 32, 32>}, {pipeline_mode = #tpu.pipeline_mode<synchronous>, transform_indices = @transform_1, window_bounds = array<i64: 32, 32>}, {transform_indices = @transform_2, window_bounds = array<i64: 32, 128>}, {transform_indices = @transform_3, window_bounds = array<i64: 32, 128>}, {transform_indices = @transform_4, window_bounds = array<i64: 32, 128>}, {transform_indices = @transform_5, window_bounds = array<i64: 32, 128>}]} {
    %c0 = arith.constant 0 : index
    %c0_0 = arith.constant 0 : index
    %0 = vector.load %arg1[%c0, %c0_0] : memref<32x32xf32, #tpu.memory_space<vmem>>, vector<32x32xf32>
    %c0_1 = arith.constant 0 : index
    %c0_2 = arith.constant 0 : index
    %1 = vector.load %arg2[%c0_1, %c0_2] : memref<32x32xf32, #tpu.memory_space<vmem>>, vector<32x32xf32>
    %c0_3 = arith.constant 0 : index
    %c0_4 = arith.constant 0 : index
    %2 = vector.load %arg4[%c0_3, %c0_4] : memref<32x128xf32, #tpu.memory_space<vmem>>, vector<32x128xf32>
    %c0_5 = arith.constant 0 : index
    %c0_6 = arith.constant 0 : index
    %3 = vector.load %arg5[%c0_5, %c0_6] : memref<32x128xf32, #tpu.memory_space<vmem>>, vector<32x128xf32>
    %cst = arith.constant dense<0.000000e+00> : vector<32x128xf32>
    %4 = tpu.matmul %0, %2, %cst {dimension_numbers = #tpu.dot_dimension_numbers<[1], [0], [0], [1], [0, 0, 1, 1], [], []>} : vector<32x32xf32>, vector<32x128xf32>, vector<32x128xf32> -> vector<32x128xf32>
    %cst_7 = arith.constant dense<0.000000e+00> : vector<32x128xf32>
    %5 = tpu.matmul %1, %3, %cst_7 {dimension_numbers = #tpu.dot_dimension_numbers<[1], [0], [0], [1], [0, 0, 1, 1], [], []>} : vector<32x32xf32>, vector<32x128xf32>, vector<32x128xf32> -> vector<32x128xf32>
    %6 = arith.addf %4, %5 : vector<32x128xf32>
    %c0_8 = arith.constant 0 : index
    %c0_9 = arith.constant 0 : index
    %7 = vector.load %arg3[%c0_8, %c0_9] : memref<32x128xf32, #tpu.memory_space<vmem>>, vector<32x128xf32>
    %8 = arith.addf %6, %7 : vector<32x128xf32>
    %9 = arith.negf %8 : vector<32x128xf32>
    %10 = math.exp %9 : vector<32x128xf32>
    %cst_10 = arith.constant 1.000000e+00 : f32
    %11 = vector.broadcast %cst_10 : f32 to vector<32x128xf32>
    %12 = arith.addf %11, %10 : vector<32x128xf32>
    %13 = arith.divf %11, %12 : vector<32x128xf32>
    %c0_11 = arith.constant 0 : index
    %c0_12 = arith.constant 0 : index
    %14 = vector.load %arg6[%c0_11, %c0_12] : memref<32x128xf32, #tpu.memory_space<vmem>>, vector<32x128xf32>
    tpu.vector_store %arg6[%c0_11, %c0_12], %13 {strides = array<i32>} : memref<32x128xf32, #tpu.memory_space<vmem>>, vector<32x128xf32>,
    return
  }
  func.func @transform_0(%arg0: i32) -> (i32, i32) {
    %c0_i32 = arith.constant 0 : i32
    %c0_i32_0 = arith.constant 0 : i32
    %c0_i32_1 = arith.constant 0 : i32
    return %c0_i32, %c0_i32_0 : i32, i32
  }
  func.func @transform_1(%arg0: i32) -> (i32, i32) {
    %c0_i32 = arith.constant 0 : i32
    %c0_i32_0 = arith.constant 0 : i32
    %c0_i32_1 = arith.constant 0 : i32
    return %c0_i32, %c0_i32_0 : i32, i32
  }
  func.func @transform_2(%arg0: i32) -> (i32, i32) {
    %c0_i32 = arith.constant 0 : i32
    %c0_i32_0 = arith.constant 0 : i32
    return %c0_i32, %arg0 : i32, i32
  }
  func.func @transform_3(%arg0: i32) -> (i32, i32) {
    %c0_i32 = arith.constant 0 : i32
    %c0_i32_0 = arith.constant 0 : i32
    return %c0_i32, %arg0 : i32, i32
  }
  func.func @transform_4(%arg0: i32) -> (i32, i32) {
    %c0_i32 = arith.constant 0 : i32
    %c0_i32_0 = arith.constant 0 : i32
    return %c0_i32, %arg0 : i32, i32
  }
  func.func @transform_5(%arg0: i32) -> (i32, i32) {
    %c0_i32 = arith.constant 0 : i32
    %c0_i32_0 = arith.constant 0 : i32
    return %c0_i32, %arg0 : i32, i32
  }
}

</mosaic_0001>

<bundles_post_ra>
// kernel: tpu_custom_call.1
= control target key start
LH: loop header
LB: loop body
LE: loop exit
PB: predicated region body
PF: predicated region fallthrough
CT: control target
= control target key end

     0   :  { %10 = vsyncpa [#allocation3], 0  ;;  %s745_s0 = inlined_call_operand.hbm [shape: f32[32,32], index: 0, kind: input, shape index: {}]   ;;  %s746_s1 = inlined_call_operand.hbm [shape: f32[32,32], index: 1, kind: input, shape index: {}]   ;;  %s747_s2 = inlined_call_operand.hbm [shape: f32[32,128], index: 2, kind: input, shape index: {}]   ;;  %s748_s3 = inlined_call_operand.hbm [shape: f32[32,128], index: 3, kind: input, shape index: {}]   ;;  %s749_s4 = inlined_call_operand.hbm [shape: f32[32,128], index: 4, kind: input, shape index: {}]   ;;  %s750_s5 = inlined_call_operand.hbm [shape: f32[32,128], index: 5, kind: output, shape index: {}]  }
   0x1   :  { %11 = vsyncpa [#allocation6], 0 }
   0x2   :  { %12 = vsyncpa [#allocation9], 0 }
   0x3   :  { %13 = vsyncpa [#allocation4], 0  ;;  %s595_s18 = smov [#allocation5]   ;;  %s596_s20 = smov [#allocation8]  }
   0x4   :  { %s31_s19 = sshll.u32 %s595_s18, 4  ;;  %s55_s21 = sshll.u32 %s596_s20, 4  ;;  %s32_s19 = int_to_ptr.vmem [resolvable:$true] %s31_s19  ;;  %s633_s21 = int_to_ptr.vmem [resolvable:$true] %s55_s21 }
   0x5   :  { %s455_s24 = scalar_lea.hbm %s746_s1, 512 }
   0x6   :  { %p456_p0 = scmp.ne.s32.totalorder %s746_s1, %s455_s24  ;;  %p459_p1 = scmp.lt.u32.totalorder %s455_s24, %s746_s1 }
   0x8   :  { %p461_p2 = pnand %p459_p1, %p456_p0 }
   0xa   :  { %464 = shalt.err (!%p461_p2)
}
   0xb   :  { %s465_s29 = scalar_lea.vmem %s32_s19, 512  ;;  %p470_p4 = scmp.lt.s32.totalorder %s32_s19, %s32_s19 }
   0xc   :  { %p466_p3 = scmp.ne.s32.totalorder %s32_s19, %s465_s29  ;;  %p471_p5 = scmp.lt.s32.totalorder %s465_s29, %s465_s29 }
   0xe   :  { %p472_p6 = por %p471_p5, %p470_p4 }
  0x10   :  { %p473_p7 = pnand %p472_p6, %p466_p3 }
  0x12   :  { %476 = shalt.err (!%p473_p7)
}
  0x13   :  { %s597_s30 = smov 128   ;;  %s598_s6 = smov 8  }
  0x14   :  { %37 = dma.hbm_to_vmem [thread:$0]  %s746_s1, 512, %s32_s19, [#allocation6], %s597_s30, %s597_s30, %s598_s6  }
  0x15   :  { %s477_s11 = scalar_lea.hbm %s748_s3, 512 }
  0x16   :  { %p478_p8 = scmp.ne.s32.totalorder %s748_s3, %s477_s11  ;;  %p481_p9 = scmp.lt.u32.totalorder %s477_s11, %s748_s3 }
  0x18   :  { %p483_p10 = pnand %p481_p9, %p478_p8 }
  0x1a   :  { %486 = shalt.err (!%p483_p10)
}
  0x1b   :  { %s487_s16 = scalar_lea.vmem %s633_s21, 512  ;;  %p492_p12 = scmp.lt.s32.totalorder %s633_s21, %s633_s21 }
  0x1c   :  { %p488_p11 = scmp.ne.s32.totalorder %s633_s21, %s487_s16  ;;  %p493_p13 = scmp.lt.s32.totalorder %s487_s16, %s487_s16 }
  0x1e   :  { %p494_p0 = por %p493_p13, %p492_p12 }
  0x20   :  { %p495_p1 = pnand %p494_p0, %p488_p11 }
  0x22   :  { %498 = shalt.err (!%p495_p1)
}
  0x23   :  { %61 = dma.hbm_to_vmem [thread:$0]  %s748_s3, 512, %s633_s21, [#allocation9], %s597_s30, %s597_s30, %s598_s6  }
  0x24   :  { %s599_s18 = smov [#allocation2]   ;;  %s600_s20 = smov [#allocation7]  }
  0x25   :  { %s19_s19 = sshll.u32 %s599_s18, 4  ;;  %s43_s22 = sshll.u32 %s600_s20, 4  ;;  %s20_s19 = int_to_ptr.vmem [resolvable:$true] %s19_s19  ;;  %s670_s22 = int_to_ptr.vmem [resolvable:$true] %s43_s22 }
  0x26   :  { %s499_s25 = scalar_lea.hbm %s745_s0, 512 }
  0x27   :  { %p500_p2 = scmp.ne.s32.totalorder %s745_s0, %s499_s25  ;;  %p503_p3 = scmp.lt.u32.totalorder %s499_s25, %s745_s0 }
  0x29   :  { %p505_p4 = pnand %p503_p3, %p500_p2 }
  0x2b   :  { %508 = shalt.err (!%p505_p4)
}
  0x2c   :  { %s509_s3 = scalar_lea.vmem %s20_s19, 512  ;;  %p514_p6 = scmp.lt.s32.totalorder %s20_s19, %s20_s19 }
  0x2d   :  { %p510_p5 = scmp.ne.s32.totalorder %s20_s19, %s509_s3  ;;  %p515_p7 = scmp.lt.s32.totalorder %s509_s3, %s509_s3 }
  0x2f   :  { %p516_p8 = por %p515_p7, %p514_p6 }
  0x31   :  { %p517_p9 = pnand %p516_p8, %p510_p5 }
  0x33   :  { %520 = shalt.err (!%p517_p9)
}
  0x34   :  { %25 = dma.hbm_to_vmem [thread:$0]  %s745_s0, 512, %s20_s19, [#allocation3], %s597_s30, %s597_s30, %s598_s6  }
  0x35   :  { %s521_s10 = scalar_lea.hbm %s747_s2, 512 }
  0x36   :  { %p522_p10 = scmp.ne.s32.totalorder %s747_s2, %s521_s10  ;;  %p525_p11 = scmp.lt.u32.totalorder %s521_s10, %s747_s2 }
  0x38   :  { %p527_p12 = pnand %p525_p11, %p522_p10 }
  0x3a   :  { %530 = shalt.err (!%p527_p12)
}
  0x3b   :  { %s531_s15 = scalar_lea.vmem %s670_s22, 512  ;;  %p536_p0 = scmp.lt.s32.totalorder %s670_s22, %s670_s22 }
  0x3c   :  { %p532_p13 = scmp.ne.s32.totalorder %s670_s22, %s531_s15  ;;  %p537_p1 = scmp.lt.s32.totalorder %s531_s15, %s531_s15 }
  0x3e   :  { %p538_p2 = por %p537_p1, %p536_p0 }
  0x40   :  { %p539_p3 = pnand %p538_p2, %p532_p13 }
  0x42   :  { %542 = shalt.err (!%p539_p3)
}
  0x43   :  { %49 = dma.hbm_to_vmem [thread:$0]  %s747_s2, 512, %s670_s22, [#allocation6], %s597_s30, %s597_s30, %s598_s6  }
  0x44   :  { %s601_s1 = smov [#allocation10]   ;;  %s543_s20 = scalar_lea.hbm %s749_s4, 512 }
  0x45   :  { %s67_s17 = sshll.u32 %s601_s1, 4  ;;  %p544_p4 = scmp.ne.s32.totalorder %s749_s4, %s543_s20  ;;  %s68_s17 = int_to_ptr.vmem [resolvable:$true] %s67_s17 }
  0x46   :  { %p547_p5 = scmp.lt.u32.totalorder %s543_s20, %s749_s4 }
  0x48   :  { %p549_p6 = pnand %p547_p5, %p544_p4 }
  0x4a   :  { %552 = shalt.err (!%p549_p6)
}
  0x4b   :  { %s553_s27 = scalar_lea.vmem %s68_s17, 512  ;;  %p558_p8 = scmp.lt.s32.totalorder %s68_s17, %s68_s17 }
  0x4c   :  { %p554_p7 = scmp.ne.s32.totalorder %s68_s17, %s553_s27  ;;  %p559_p9 = scmp.lt.s32.totalorder %s553_s27, %s553_s27 }
  0x4e   :  { %p560_p10 = por %p559_p9, %p558_p8 }
  0x50   :  { %p561_p11 = pnand %p560_p10, %p554_p7 }
  0x52   :  { %564 = shalt.err (!%p561_p11)
}
  0x53   :  { %73 = dma.hbm_to_vmem [thread:$0]  %s749_s4, 512, %s68_s17, [#allocation9], %s597_s30, %s597_s30, %s598_s6  }
  0x54   :  { %587 = dma.done.wait [#allocation3], 512  }
  0x55   :  { %588 = vsyncadd [#allocation3], 4294966784 }
  0x56   :  { %589 = dma.done.wait [#allocation6], 1024  }
  0x57   :  { %590 = vsyncadd [#allocation6], 4294966272 }
  0x58   :  { %591 = dma.done.wait [#allocation9], 1024  }
  0x59   :  { %592 = vsyncadd [#allocation9], 4294966272  ;;  %v101_v0 = vld [vmem:[#allocation10] sm:$0xff]  ;;  %v102_v1 = vld [vmem:[#allocation10 + $0x8] sm:$0xff]  ;;  %vm105_vm0 = vcmask 261120   ;;  %s602_s4 = smov [#allocation11]  }
  0x5a   :  { %v97_v2 = vld [vmem:[#allocation8] sm:$0xff]  ;;  %v411_v3 = vpack.c.bf16 %v102_v1, %v101_v0  ;;  %v98_v4 = vld [vmem:[#allocation8 + $0x8] sm:$0xff]  ;;  %v103_v5 = vld [vmem:[#allocation10 + $0x10] sm:$0xff]  ;;  %s341_s28 = sshll.u32 %s602_s4, 4  ;;  %s342_s28 = int_to_ptr.vmem [resolvable:$true] %s341_s28 }
  0x5b   :  { %v104_v6 = vld [vmem:[#allocation10 + $0x18] sm:$0xff]  ;;  %v419_v7 = vpack.c.bf16 %v98_v4, %v97_v2  ;;  %v99_v9 = vld [vmem:[#allocation8 + $0x10] sm:$0xff]  ;;  %v93_v11 = vld [vmem:[#allocation5] sm:$0xff]  ;;  %s565_s29 = scalar_lea.vmem %s342_s28, 512  ;;  %p570_p13 = scmp.lt.s32.totalorder %s342_s28, %s342_s28 }
  0x5c   :  { %v415_v8 = vpack.c.bf16 %v104_v6, %v103_v5  ;;  %v100_v10 = vld [vmem:[#allocation8 + $0x18] sm:$0xff]  ;;  %412 = vmatprep.subr.bf16.mxu1 %v411_v3  ;;  %391 = vmatprep.mubr.msk.f32.mxu1 %vm105_vm0, %v93_v11  ;;  %v89_v13 = vld [vmem:[#allocation2] sm:$0xff]  ;;  %v94_v14 = vld [vmem:[#allocation5 + $0x8] sm:$0xff]  ;;  %p566_p12 = scmp.ne.s32.totalorder %s342_s28, %s565_s29  ;;  %p571_p0 = scmp.lt.s32.totalorder %s565_s29, %s565_s29 }
  0x5d   :  { %v423_v12 = vpack.c.bf16 %v100_v10, %v99_v9  ;;  %420 = vmatprep.subr.bf16.mxu0 %v419_v7  ;;  %414 = vmatpush3.bf16.msra.mxu1 %v411_v3  ;;  %v90_v15 = vld [vmem:[#allocation2 + $0x8] sm:$0xff]  ;;  %v95_v16 = vld [vmem:[#allocation5 + $0x10] sm:$0xff]  ;;  %v96_v18 = vld [vmem:[#allocation5 + $0x18] sm:$0xff] }
  0x5e   :  { %422 = vmatpush3.bf16.msra.mxu0 %v419_v7  ;;  %416 = vmatprep.subr.bf16.mxu1 %v415_v8  ;;  %v91_v17 = vld [vmem:[#allocation2 + $0x10] sm:$0xff]  ;;  %v92_v19 = vld [vmem:[#allocation2 + $0x18] sm:$0xff]  ;;  %v301_v22 = vld [vmem:[#allocation7 + $0x8] sm:$0xff]  ;;  %p572_p1 = por %p571_p0, %p570_p13 }
  0x5f   :  { %424 = vmatprep.subr.bf16.mxu0 %v423_v12  ;;  %405 = vmatprep.mubr.msk.f32.mxu0 %vm105_vm0, %v89_v13  ;;  %v300_v26 = vld [vmem:[#allocation7] sm:$0xff]  ;;  %v303_v32 = vld [vmem:[#allocation7 + $0x18] sm:$0xff]  ;;  %v302_v37 = vld [vmem:[#allocation7 + $0x10] sm:$0xff] }
  0x60   :  { %p573_p2 = pnand %p572_p1, %p566_p12 }
  0x61   :  { %418 = vmatpush3.bf16.msra.mxu1 %v415_v8 }
  0x62   :  { %426 = vmatpush3.bf16.msra.mxu0 %v423_v12 }
  0x64   :  { %392 = vmatmul.mubr.msk.f32.vlgmr.msra.gmra.mrb[0].mxu1 %vm105_vm0, %v94_v14 }
  0x65   :  { %406 = vmatmul.mubr.msk.f32.vlgmr.msra.gmra.mrb[0].mxu0 %vm105_vm0, %v90_v15  ;;  %394 = vmatprep.mubr.msk.f32.mxu1 %vm105_vm0, %v95_v16 }
  0x66   :  { %408 = vmatprep.mubr.msk.f32.mxu0 %vm105_vm0, %v91_v17 }
  0x68   :  { %395 = vmatmul.mubr.msk.f32.gmra.mrb[2].mxu1 %vm105_vm0, %v96_v18 }
  0x69   :  { %409 = vmatmul.mubr.msk.f32.gmra.mrb[2].mxu0 %vm105_vm0, %v92_v19 }
 0x137   :  { %v393_v20 = vpop.f32.mrb[0].mxu1 }
 0x138   :  { %v407_v21 = vpop.f32.mrb[0].mxu0  ;;  %v184_v23 = vpop.f32.mrb[1].mxu1 }
 0x139   :  { %v287_v24 = vadd.f32 %v407_v21, %v393_v20  ;;  %v281_v25 = vpop.f32.mrb[1].mxu0 }
 0x13a   :  { %v282_v27 = vadd.f32 %v281_v25, %v184_v23 }
 0x13b   :  { %v305_v28 = vadd.f32 %v301_v22, %v287_v24  ;;  %v396_v29 = vpop.f32.mrb[2].mxu1 }
 0x13c   :  { %v304_v30 = vadd.f32 %v300_v26, %v282_v27  ;;  %v410_v31 = vpop.f32.mrb[2].mxu0  ;;  %v194_v33 = vpop.f32.mrb[3].mxu1 }
 0x13d   :  { %v364_v34 = vmul.f32 -1.442695, %v305_v28  ;;  %v297_v35 = vadd.f32 %v410_v31, %v396_v29  ;;  %v291_v36 = vpop.f32.mrb[3].mxu0 }
 0x13e   :  { %v363_v38 = vmul.f32 -1.442695, %v304_v30  ;;  %v292_v39 = vadd.f32 %v291_v36, %v194_v33 }
 0x13f   :  { %439 = vpow2.f32 %v364_v34  ;;  %v307_v40 = vadd.f32 %v303_v32, %v297_v35 }
 0x140   :  { %441 = vpow2.f32 %v363_v38  ;;  %v306_v41 = vadd.f32 %v302_v37, %v292_v39 }
 0x141   :  { %v366_v42 = vmul.f32 -1.442695, %v307_v40 }
 0x142   :  { %v365_v43 = vmul.f32 -1.442695, %v306_v41 }
 0x143   :  { %443 = vpow2.f32 %v366_v42 }
 0x144   :  { %445 = vpow2.f32 %v365_v43 }
 0x149   :  { %v440_v44 = vpop.eup %439 }
 0x14a   :  { %v442_v45 = vpop.eup %441  ;;  %v321_v46 = vadd.f32 1.0, %v440_v44 }
 0x14b   :  { %v320_v47 = vadd.f32 1.0, %v442_v45 }
 0x14c   :  { %447 = vrcp.f32 %v321_v46 }
 0x14d   :  { %v444_v48 = vpop.eup %443  ;;  %449 = vrcp.f32 %v320_v47 }
 0x14e   :  { %v446_v49 = vpop.eup %445  ;;  %v323_v50 = vadd.f32 1.0, %v444_v48 }
 0x14f   :  { %v322_v51 = vadd.f32 1.0, %v446_v49 }
 0x150   :  { %451 = vrcp.f32 %v323_v50 }
 0x151   :  { %453 = vrcp.f32 %v322_v51 }
 0x156   :  { %v448_v52 = vpop.eup %447 }
 0x157   :  { %v450_v53 = vpop.eup %449  ;;  %333 = vst [vmem:[#allocation11 + $0x8] sm:$0xff] %v448_v52 }
 0x158   :  { %332 = vst [vmem:[#allocation11] sm:$0xff] %v450_v53 }
 0x15a   :  { %v452_v54 = vpop.eup %451 }
 0x15b   :  { %v454_v55 = vpop.eup %453  ;;  %335 = vst [vmem:[#allocation11 + $0x18] sm:$0xff] %v452_v54 }
 0x15c   :  { %334 = vst [vmem:[#allocation11 + $0x10] sm:$0xff] %v454_v55 }
 0x15d   :  { %576 = shalt.err (!%p573_p2)
}
 0x15e   :  { %s577_s7 = scalar_lea.hbm %s750_s5, 512 }
 0x15f   :  { %p578_p3 = scmp.ne.s32.totalorder %s750_s5, %s577_s7  ;;  %p581_p4 = scmp.lt.u32.totalorder %s577_s7, %s750_s5 }
 0x161   :  { %p583_p5 = pnand %p581_p4, %p578_p3 }
 0x163   :  { %586 = shalt.err (!%p583_p5)
}
 0x164   :  { %347 = dma.vmem_to_hbm [thread:$0]  %s342_s28, 512, %s750_s5, [#allocation4], %s597_s30, %s597_s30, %s598_s6  }
 0x165   :  { %593 = dma.done.wait [#allocation4], 512  }
 0x166   :  { %594 = vsyncadd [#allocation4], 4294966784 }
 0x167   :  { %351 = vsyncpa [#allocation3], 1 }
 0x168   :  { %352 = vsyncpa [#allocation6], 1 }
 0x169   :  { %353 = vsyncpa [#allocation9], 1 }
 0x16a   :  { %354 = vsyncpa [#allocation4], 1 }

</bundles_post_ra>
